<compile_context>
chip_gen: v7x
topology: tpu7x:2x2x1
jax: 0.10.0
libtpu: 0.0.40
codegen_flags: <defaults>
</compile_context>

<pallas_src>
import jax
import jax.numpy as jnp
from jax.experimental import pallas as pl
from jax.experimental.pallas import tpu as pltpu


def _conv_out_major_kernel(p_ref, w_ref, o_ref):
    # p_ref: (K, TM) im2col patch tile, w_ref: (Cout, K), o_ref: (Cout, TM)
    o_ref[...] = jnp.dot(
        w_ref[...], p_ref[...], preferred_element_type=jnp.float32
    ).astype(o_ref.dtype)


def _round_up(x, m):
    return (x + m - 1) // m * m


def extension_channels_forward(x_hwc, weight_oihw):
    """Forward pass of `extension_channels`.

    x_hwc:       (h, w, c) float32   (c must be 3, matching conv1 in_channels)
    weight_oihw: (256, 3, 3, 3) float32  -- conv1.weight in PyTorch OIHW layout
    returns:     (1, 256, h, w) float32
    """
    h, w, c = x_hwc.shape
    cout, cin, kh, kw = weight_oihw.shape
    assert c == cin, "reshape(b, c, h, w) requires c == conv in_channels"

    M = h * w
    K = kh * kw * cin

    # --- exact PyTorch semantics: raw reshape (row-major), NOT a transpose ---
    x_chw = x_hwc.reshape(cin, h, w).astype(jnp.float32)    # (c, h, w), b=1 squeezed

    # --- glue: transposed im2col patches (K, M); row = (ti*kw + tj)*cin + ci --
    x_pad = jnp.pad(x_chw, ((0, 0), (1, 1), (1, 1)))        # padding = 1
    patches_T = jnp.stack(
        [x_pad[:, i:i + h, j:j + w] for i in range(kh) for j in range(kw)],
        axis=0,
    ).reshape(K, M)

    # weight OIHW -> (Cout, kh, kw, cin) -> (Cout, K): same tap/channel order
    w_mat = jnp.transpose(weight_oihw, (0, 2, 3, 1)).reshape(cout, K)
    w_mat = w_mat.astype(jnp.float32)

    # --- tile the M (= h*w) axis with large, lane-dense tiles ------------------
    TM = min(2048, _round_up(M, 128))
    if M > 128 and pl.cdiv(M, TM) < 2:
        # split so the grid has >= 2 parallel steps (v7x megacore)
        TM = _round_up(pl.cdiv(M, 2), 128)
    grid = (pl.cdiv(M, TM),)          # ragged last tile is masked by Pallas

    cost = pl.CostEstimate(
        flops=2 * M * K * cout,
        transcendentals=0,
        bytes_accessed=4 * (K * M + cout * K + cout * M),
    )

    out_flat = pl.pallas_call(
        _conv_out_major_kernel,
        out_shape=jax.ShapeDtypeStruct((cout, M), jnp.float32),
        grid=grid,
        in_specs=[
            pl.BlockSpec((K, TM), lambda i: (0, i)),        # patch tile
            pl.BlockSpec((cout, K), lambda i: (0, 0)),      # weight, resident
        ],
        out_specs=pl.BlockSpec((cout, TM), lambda i: (0, i)),
        compiler_params=pltpu.CompilerParams(
            dimension_semantics=("parallel",),
        ),
        cost_estimate=cost,
    )(patches_T, w_mat)

    # --- free: (Cout, M) is already NCHW memory order --------------------------
    return out_flat.reshape(cout, h, w)[None]               # (1, 256, h, w)


def _reference_forward(x_hwc, weight_oihw):
    """Pure-JAX reference (mirrors torch.nn.Conv2d on the reshaped input)."""
    h, w, c = x_hwc.shape
    x_nchw = x_hwc.reshape(1, c, h, w)
    return jax.lax.conv_general_dilated(
        x_nchw,
        weight_oihw,
        window_strides=(1, 1),
        padding=((1, 1), (1, 1)),
        dimension_numbers=("NCHW", "OIHW", "NCHW"),
    )


if __name__ == "__main__":
    key = jax.random.PRNGKey(0)
    kx, kw_ = jax.random.split(key)

    # conv1: (256, 3, 3, 3), matching nn.Conv2d(3, 256, 3, 1, 1, bias=False)
    conv1_weight = (
        jax.random.normal(kw_, (256, 3, 3, 3), dtype=jnp.float32) * 0.1
    )

    # (h, w, c=3) inputs: one 128-aligned case and one ragged case.
    for (h, w) in [(16, 16), (24, 20)]:
        x = jax.random.normal(kx, (h, w, 3), dtype=jnp.float32)

        out = jax.block_until_ready(extension_channels_forward(x, conv1_weight))
        assert out.shape == (1, 256, h, w), out.shape

        ref = jax.block_until_ready(_reference_forward(x, conv1_weight))
        max_err = float(jnp.max(jnp.abs(out - ref)))
        assert jnp.allclose(out, ref, rtol=1e-3, atol=1e-3), max_err

    print("KERNEL_OK")
</pallas_src>

<mosaic_0001>
module attributes {stable_mosaic.version = 11 : i64} {
  func.func @_conv_out_major_kernel(%arg0: i32, %arg1: memref<27x128xf32, #tpu.memory_space<vmem>>, %arg2: memref<256x27xf32, #tpu.memory_space<vmem>>, %arg3: memref<256x128xf32, #tpu.memory_space<vmem>>) attributes {dimension_semantics = [#tpu.dimension_semantics<parallel>], iteration_bounds = array<i64: 2>, scalar_prefetch = 0 : i64, scratch_operands = 0 : i64, tpu.core_type = #tpu.core_type<tc>, window_params = [{transform_indices = @transform_0, window_bounds = array<i64: 27, 128>}, {pipeline_mode = #tpu.pipeline_mode<synchronous>, transform_indices = @transform_1, window_bounds = array<i64: 256, 27>}, {transform_indices = @transform_2, window_bounds = array<i64: 256, 128>}]} {
    %c0 = arith.constant 0 : index
    %c0_0 = arith.constant 0 : index
    %0 = vector.load %arg2[%c0, %c0_0] : memref<256x27xf32, #tpu.memory_space<vmem>>, vector<256x27xf32>
    %c0_1 = arith.constant 0 : index
    %c0_2 = arith.constant 0 : index
    %1 = vector.load %arg1[%c0_1, %c0_2] : memref<27x128xf32, #tpu.memory_space<vmem>>, vector<27x128xf32>
    %cst = arith.constant dense<0.000000e+00> : vector<256x128xf32>
    %2 = tpu.matmul %0, %1, %cst {dimension_numbers = #tpu.dot_dimension_numbers<[1], [0], [0], [1], [0, 0, 1, 1], [], []>} : vector<256x27xf32>, vector<27x128xf32>, vector<256x128xf32> -> vector<256x128xf32>
    %c0_3 = arith.constant 0 : index
    %c0_4 = arith.constant 0 : index
    %3 = vector.load %arg3[%c0_3, %c0_4] : memref<256x128xf32, #tpu.memory_space<vmem>>, vector<256x128xf32>
    tpu.vector_store %arg3[%c0_3, %c0_4], %2 {strides = array<i32>} : memref<256x128xf32, #tpu.memory_space<vmem>>, vector<256x128xf32>,
    return
  }
  func.func @transform_0(%arg0: i32) -> (i32, i32) {
    %c0_i32 = arith.constant 0 : i32
    %c0_i32_0 = arith.constant 0 : i32
    return %c0_i32, %arg0 : i32, i32
  }
  func.func @transform_1(%arg0: i32) -> (i32, i32) {
    %c0_i32 = arith.constant 0 : i32
    %c0_i32_0 = arith.constant 0 : i32
    %c0_i32_1 = arith.constant 0 : i32
    return %c0_i32, %c0_i32_0 : i32, i32
  }
  func.func @transform_2(%arg0: i32) -> (i32, i32) {
    %c0_i32 = arith.constant 0 : i32
    %c0_i32_0 = arith.constant 0 : i32
    return %c0_i32, %arg0 : i32, i32
  }
}

</mosaic_0001>

<bundles_post_ra>
// kernel: tpu_custom_call.1
= control target key start
LH: loop header
LB: loop body
LE: loop exit
PB: predicated region body
PF: predicated region fallthrough
CT: control target
= control target key end

     0   :  { %7 = vsyncpa [#allocation4], 0  ;;  %s1216_s0 = inlined_call_operand.vmem [shape: f32[27,256], index: 0, kind: input, shape index: {}]   ;;  %s1217_s1 = inlined_call_operand.vmem [shape: f32[256,27], index: 1, kind: input, shape index: {}]   ;;  %s1218_s2 = inlined_call_operand.hbm [shape: f32[256,256], index: 2, kind: output, shape index: {}]  }
   0x1   :  { %9 = vsyncpa [#allocation4 + $0x1], 0  ;;  %s941_s9 = smov 0   ;;  %s943_s10 = smov 0  }
   0x2   :  { %s945_s11 = smov 0   ;;  %s947_s12 = smov 0  }
   0x3 LB: > { %s662_s13 = sadd.s32 4294967295, %s919_s12   ;;  %s663_s14 = sadd.s32 4294967294, %s919_s12   ;;  %s919_s12 = sphi %s947_s12, %s1224_s12   ;;  %s915_s11 = sphi %s945_s11, %s1223_s11   ;;  %s911_s10 = sphi %s943_s10, %s1222_s10   ;;  %s907_s9 = sphi %s941_s9, %s1221_s9  }
   0x4   : > { %s964_s15 = sadd.s32 1, %s919_s12   ;;  %s22_s16 = sadd.s32 1, %s915_s11 }
   0x5   : > { %s19_s17 = ssub.s32 %s919_s12, %s964_s15  ;;  %p29_p0 = scmp.ne.s32.totalorder %s915_s11, %s911_s10 }
   0x6   : > { %p20_p1 = scmp.eq.s32.totalorder %s19_s17, 0  ;;  %p30_p2 = scmp.eq.s32.totalorder %s919_s12, 0 }
   0x7   : > { %p80_p3 = scmp.eq.s32.totalorder %s662_s13, 1  ;;  %p85_p4 = scmp.ne.s32.totalorder %s911_s10, %s907_s9 }
   0x8   : > { %s977_s18 = scalar_select %p20_p1, %s915_s11, %s22_s16  }
   0x9   : > { %p31_p5 = por %p30_p2, %p29_p0  ;;  %p979_p6 = por %p80_p3, %p29_p0 }
   0xa   : > { %p86_p7 = scmp.eq.s32.totalorder %s663_s14, 1  ;;  %p665_p9 = scmp.ge.s32.totalorder %s919_s12, 2 }
   0xc   : > { %p983_p8 = por %p86_p7, %p85_p4  ;;  %105 = sbr.rel (%p665_p9) target bundleno = 26 (0x1a), region = 20 }
  0x13   : > { %108 = sbr.rel (!%p31_p5) target bundleno = 26 (0x1a), region = 24  ;;  %s110_s21 = sand.u32 (%p31_p5), 1, %s915_s11  }
  0x14   : > { %s667_s22 = sshll.u32 (%p31_p5), %s919_s12, 3  ;;  %s666_s23 = sshll.u32 (%p31_p5), %s110_s21, 5 }
  0x15   : > { %s114_s26 = scalar_lea.vmem (%p31_p5), %s1216_s0, %s667_s22  ;;  %s112_s27 = scalar_lea.vmem (%p31_p5), [#allocation2], %s666_s23 }
  0x16   : > { %v148_v0 = vld [vmem:[%s114_s26] sm:$0xff] (%p31_p5)  ;;  %v150_v1 = vld [vmem:[%s114_s26 + $0x10] sm:$0xff] (%p31_p5) }
  0x17   : > { %v152_v2 = vld [vmem:[%s114_s26 + $0x20] sm:$0xff] (%p31_p5)  ;;  %149 = vst [vmem:[%s112_s27] sm:$0xff] (%p31_p5), %v148_v0  ;;  %151 = vst [vmem:[%s112_s27 + $0x8] sm:$0xff] (%p31_p5), %v150_v1  ;;  %v154_v3 = vld [vmem:[%s114_s26 + $0x30] sm:$0xff] (%p31_p5) }
  0x18   : > { %153 = vst [vmem:[%s112_s27 + $0x10] sm:$0xff] (%p31_p5), %v152_v2  ;;  %155 = vst [vmem:[%s112_s27 + $0x18] sm:$0xff] (%p31_p5), %v154_v3 }
  0x1a PF: > { %p668_p10 = scmp.ge.s32.totalorder %s919_s12, 1  ;;  %p160_p11 = scmp.lt.s32.totalorder %s919_s12, 3 }
  0x1c   : > { %p161_p12 = pnand %p668_p10, %p160_p11 }
  0x1d   : > { %s998_s28 = sand.u32 (!%p161_p12), 1, %s911_s10   ;;  %v188_v4 = vld [vmem:[%s1217_s1] sm:$0xff] (!%p161_p12)  ;;  %vm224_vm0 = vcmask (!%p161_p12), 220160   ;;  %vm321_vm1 = vcmask (!%p161_p12), 1042432   ;;  %vm921_vm2 = vmmov (!%p161_p12), 1   ;;  %v189_v12 = vld [vmem:[%s1217_s1 + $0x8] sm:$0xff] (!%p161_p12) }
  0x1e   : > { %164 = sbr.rel (%p161_p12) target bundleno = 300 (0x12c), region = 62  ;;  %v204_v5 = vld [vmem:[%s1217_s1 + $0x80] sm:$0xff] (!%p161_p12)  ;;  %s669_s5 = sshll.u32 (!%p161_p12), %s998_s28, 5  ;;  %752 = vmatprep.mubr.msk.f32.mxu0 (!%p161_p12), %vm224_vm0, %v188_v4  ;;  %vm805_vm3 = vmpackc.low (!%p161_p12), %vm321_vm1, %vm921_vm2  ;;  %v205_v13 = vld [vmem:[%s1217_s1 + $0x88] sm:$0xff] (!%p161_p12) }
  0x1f   : > { %776 = vmatprep.mubr.msk.f32.mxu1 (!%p161_p12), %vm224_vm0, %v204_v5  ;;  %s169_s6 = scalar_lea.vmem (!%p161_p12), [#allocation2], %s669_s5  ;;  %v190_v14 = vld [vmem:[%s1217_s1 + $0x10] sm:$0xff] (!%p161_p12)  ;;  %v191_v16 = vld [vmem:[%s1217_s1 + $0x18] sm:$0xff] (!%p161_p12)  ;;  %v192_v18 = vld [vmem:[%s1217_s1 + $0x20] sm:$0xff] (!%p161_p12)  ;;  %s670_s22 = sshll.u32 (!%p161_p12), %s998_s28, 8 }
  0x20   : > { %v220_v6 = vld [vmem:[%s169_s6] sm:$0xff] (!%p161_p12)  ;;  %v221_v7 = vld [vmem:[%s169_s6 + $0x8] sm:$0xff] (!%p161_p12)  ;;  %v222_v8 = vld [vmem:[%s169_s6 + $0x10] sm:$0xff] (!%p161_p12)  ;;  %s1130_s23 = scalar_lea.vmem (!%p161_p12), [#allocation3], %s670_s22  ;;  %s705_s24 = sshll.u32 (!%p161_p12), %s662_s13, 7 }
  0x21   : > { %v800_v9 = vpack.c.bf16 (!%p161_p12), %v221_v7, %v220_v6  ;;  %v223_v10 = vld [vmem:[%s169_s6 + $0x18] sm:$0x7] (!%p161_p12)  ;;  %v206_v15 = vld [vmem:[%s1217_s1 + $0x90] sm:$0xff] (!%p161_p12)  ;;  %v208_v19 = vld [vmem:[%s1217_s1 + $0xa0] sm:$0xff] (!%p161_p12)  ;;  %s595_s25 = sshll.u32 (!%p161_p12), %s1130_s23, 4  ;;  %s1166_s29 = scalar_lea.hbm (!%p161_p12), %s1218_s2, %s705_s24  ;;  %s1168_s25 = int_to_ptr.vmem [resolvable:$true] %s595_s25 }
  0x22   : > { %v804_v11 = vpack.c.bf16 (!%p161_p12), %v223_v10, %v222_v8  ;;  %v207_v17 = vld [vmem:[%s1217_s1 + $0x98] sm:$0xff] (!%p161_p12)  ;;  %v193_v20 = vld [vmem:[%s1217_s1 + $0x28] sm:$0xff] (!%p161_p12)  ;;  %v194_v22 = vld [vmem:[%s1217_s1 + $0x30] sm:$0xff] (!%p161_p12)  ;;  %s583_s13 = scalar_lea.sflag (!%p161_p12), [#allocation4], %s998_s28  ;;  %s857_s30 = scalar_lea.vmem (!%p161_p12), %s1168_s25, 4096 }
  0x23   : > { %801 = vmatprep.subr.bf16.mxu0 (!%p161_p12), %v800_v9  ;;  %810 = vmatprep.subr.bf16.mxu1 (!%p161_p12), %v800_v9  ;;  %v209_v21 = vld [vmem:[%s1217_s1 + $0xa8] sm:$0xff] (!%p161_p12)  ;;  %v210_v23 = vld [vmem:[%s1217_s1 + $0xb0] sm:$0xff] (!%p161_p12)  ;;  %v195_v24 = vld [vmem:[%s1217_s1 + $0x38] sm:$0xff] (!%p161_p12)  ;;  %p858_p13 = scmp.ne.s32.totalorder (!%p161_p12), %s1168_s25, %s857_s30  ;;  %s922_s3 = smov (!%p161_p12), [#allocation3]  }
  0x24   : > { %803 = vmatpush3.bf16.msra.mxu0 (!%p161_p12), %v800_v9  ;;  %812 = vmatpush3.bf16.msra.mxu1 (!%p161_p12), %v800_v9  ;;  %v211_v25 = vld [vmem:[%s1217_s1 + $0xb8] sm:$0xff] (!%p161_p12)  ;;  %v196_v26 = vld [vmem:[%s1217_s1 + $0x40] sm:$0xff] (!%p161_p12)  ;;  %v197_v28 = vld [vmem:[%s1217_s1 + $0x48] sm:$0xff] (!%p161_p12)  ;;  %s861_s4 = sshll.u32 (!%p161_p12), %s922_s3, 4  ;;  %s862_s4 = int_to_ptr.vmem [resolvable:$false] %s861_s4 }
  0x25   : > { %806 = vmatprep.subr.msk.bf16.mxu0 %vm805_vm3, %v804_v11  ;;  %811 = vmatprep.subr.msk.bf16.mxu1 %vm805_vm3, %v804_v11  ;;  %v212_v27 = vld [vmem:[%s1217_s1 + $0xc0] sm:$0xff]  ;;  %v213_v29 = vld [vmem:[%s1217_s1 + $0xc8] sm:$0xff]  ;;  %v198_v30 = vld [vmem:[%s1217_s1 + $0x50] sm:$0xff]  ;;  %p859_p0 = pnand %p858_p13, %p979_p6  ;;  %s863_s5 = scalar_lea.vmem %s862_s4, 8192 }
  0x26   : > { %v214_v31 = vld [vmem:[%s1217_s1 + $0xd0] sm:$0xff]  ;;  %v199_v32 = vld [vmem:[%s1217_s1 + $0x58] sm:$0xff]  ;;  %v200_v34 = vld [vmem:[%s1217_s1 + $0x60] sm:$0xff]  ;;  %p864_p2 = scmp.lt.s32.totalorder %s1168_s25, %s862_s4  ;;  %p865_p3 = scmp.lt.s32.totalorder %s863_s5, %s857_s30 }
  0x27   : > { %v215_v33 = vld [vmem:[%s1217_s1 + $0xd8] sm:$0xff]  ;;  %v216_v35 = vld [vmem:[%s1217_s1 + $0xe0] sm:$0xff]  ;;  %v201_v36 = vld [vmem:[%s1217_s1 + $0x68] sm:$0xff]  ;;  %p860_p1 = pneg %p859_p0 }
  0x28   : > { %809 = vmatpush3.bf16.msk.msra.mxu0 %vm805_vm3, %v804_v11  ;;  %813 = vmatpush3.bf16.msk.msra.mxu1 %vm805_vm3, %v804_v11  ;;  %v217_v37 = vld [vmem:[%s1217_s1 + $0xe8] sm:$0xff]  ;;  %v202_v38 = vld [vmem:[%s1217_s1 + $0x70] sm:$0xff]  ;;  %v203_v40 = vld [vmem:[%s1217_s1 + $0x78] sm:$0xff]  ;;  %p866_p4 = por %p865_p3, %p864_p2 }
  0x29   : > { %v218_v39 = vld [vmem:[%s1217_s1 + $0xf0] sm:$0xff]  ;;  %v219_v41 = vld [vmem:[%s1217_s1 + $0xf8] sm:$0xff] }
  0x2a   : > { %p867_p5 = pnand %p866_p4, %p860_p1 }
  0x2b   : > { %753 = vmatmul.mubr.msk.f32.vlgmr.msra.gmra.mrb[0].mxu0 %vm224_vm0, %v189_v12  ;;  %777 = vmatmul.mubr.msk.f32.vlgmr.msra.gmra.mrb[0].mxu1 %vm224_vm0, %v205_v13 }
  0x2c   : > { %755 = vmatprep.mubr.msk.f32.mxu0 %vm224_vm0, %v190_v14  ;;  %779 = vmatprep.mubr.msk.f32.mxu1 %vm224_vm0, %v206_v15 }
  0x2f   : > { %756 = vmatmul.mubr.msk.f32.gmra.mrb[2].mxu0 %vm224_vm0, %v191_v16  ;;  %780 = vmatmul.mubr.msk.f32.gmra.mrb[2].mxu1 %vm224_vm0, %v207_v17 }
  0x30   : > { %758 = vmatprep.mubr.msk.f32.mxu0 %vm224_vm0, %v192_v18  ;;  %782 = vmatprep.mubr.msk.f32.mxu1 %vm224_vm0, %v208_v19 }
  0x33   : > { %759 = vmatmul.mubr.msk.f32.gmra.mrb[4].mxu0 %vm224_vm0, %v193_v20  ;;  %783 = vmatmul.mubr.msk.f32.gmra.mrb[4].mxu1 %vm224_vm0, %v209_v21 }
  0x34   : > { %761 = vmatprep.mubr.msk.f32.mxu0 %vm224_vm0, %v194_v22  ;;  %785 = vmatprep.mubr.msk.f32.mxu1 %vm224_vm0, %v210_v23 }
  0x37   : > { %762 = vmatmul.mubr.msk.f32.gmra.mrb[6].mxu0 %vm224_vm0, %v195_v24  ;;  %786 = vmatmul.mubr.msk.f32.gmra.mrb[6].mxu1 %vm224_vm0, %v211_v25 }
  0x38   : > { %764 = vmatprep.mubr.msk.f32.mxu0 %vm224_vm0, %v196_v26  ;;  %788 = vmatprep.mubr.msk.f32.mxu1 %vm224_vm0, %v212_v27 }
  0x3b   : > { %765 = vmatmul.mubr.msk.f32.gmra.mrb[8].mxu0 %vm224_vm0, %v197_v28  ;;  %789 = vmatmul.mubr.msk.f32.gmra.mrb[8].mxu1 %vm224_vm0, %v213_v29 }
  0x3c   : > { %767 = vmatprep.mubr.msk.f32.mxu0 %vm224_vm0, %v198_v30  ;;  %791 = vmatprep.mubr.msk.f32.mxu1 %vm224_vm0, %v214_v31 }
  0x3f   : > { %768 = vmatmul.mubr.msk.f32.gmra.mrb[10].mxu0 %vm224_vm0, %v199_v32  ;;  %792 = vmatmul.mubr.msk.f32.gmra.mrb[10].mxu1 %vm224_vm0, %v215_v33 }
  0x40   : > { %770 = vmatprep.mubr.msk.f32.mxu0 %vm224_vm0, %v200_v34  ;;  %794 = vmatprep.mubr.msk.f32.mxu1 %vm224_vm0, %v216_v35 }
  0x43   : > { %771 = vmatmul.mubr.msk.f32.gmra.mrb[12].mxu0 %vm224_vm0, %v201_v36  ;;  %795 = vmatmul.mubr.msk.f32.gmra.mrb[12].mxu1 %vm224_vm0, %v217_v37 }
  0x44   : > { %773 = vmatprep.mubr.msk.f32.mxu0 %vm224_vm0, %v202_v38  ;;  %797 = vmatprep.mubr.msk.f32.mxu1 %vm224_vm0, %v218_v39 }
  0x47   : > { %774 = vmatmul.mubr.msk.f32.gmra.mrb[14].mxu0 %vm224_vm0, %v203_v40  ;;  %798 = vmatmul.mubr.msk.f32.gmra.mrb[14].mxu1 %vm224_vm0, %v219_v41 }
  0xfe   : > { %v754_v42 = vpop.f32.mrb[0].mxu0  ;;  %v778_v43 = vpop.f32.mrb[0].mxu1 }
  0xff   : > { %551 = vst [vmem:[%s1130_s23 + $0x8] sm:$0xff] %v754_v42  ;;  %567 = vst [vmem:[%s1130_s23 + $0x88] sm:$0xff] %v778_v43  ;;  %v391_v44 = vpop.f32.mrb[1].mxu0  ;;  %v471_v45 = vpop.f32.mrb[1].mxu1 }
 0x100   : > { %550 = vst [vmem:[%s1130_s23] sm:$0xff] %v391_v44  ;;  %566 = vst [vmem:[%s1130_s23 + $0x80] sm:$0xff] %v471_v45 }
 0x102   : > { %v757_v46 = vpop.f32.mrb[2].mxu0  ;;  %v781_v47 = vpop.f32.mrb[2].mxu1 }
 0x103   : > { %553 = vst [vmem:[%s1130_s23 + $0x18] sm:$0xff] %v757_v46  ;;  %569 = vst [vmem:[%s1130_s23 + $0x98] sm:$0xff] %v781_v47  ;;  %v401_v48 = vpop.f32.mrb[3].mxu0  ;;  %v481_v49 = vpop.f32.mrb[3].mxu1 }
 0x104   : > { %552 = vst [vmem:[%s1130_s23 + $0x10] sm:$0xff] %v401_v48  ;;  %568 = vst [vmem:[%s1130_s23 + $0x90] sm:$0xff] %v481_v49 }
 0x106   : > { %v760_v50 = vpop.f32.mrb[4].mxu0  ;;  %v784_v51 = vpop.f32.mrb[4].mxu1 }
 0x107   : > { %555 = vst [vmem:[%s1130_s23 + $0x28] sm:$0xff] %v760_v50  ;;  %571 = vst [vmem:[%s1130_s23 + $0xa8] sm:$0xff] %v784_v51  ;;  %v411_v52 = vpop.f32.mrb[5].mxu0  ;;  %v491_v53 = vpop.f32.mrb[5].mxu1 }
 0x108   : > { %554 = vst [vmem:[%s1130_s23 + $0x20] sm:$0xff] %v411_v52  ;;  %570 = vst [vmem:[%s1130_s23 + $0xa0] sm:$0xff] %v491_v53 }
 0x10a   : > { %v763_v54 = vpop.f32.mrb[6].mxu0  ;;  %v787_v55 = vpop.f32.mrb[6].mxu1 }
 0x10b   : > { %557 = vst [vmem:[%s1130_s23 + $0x38] sm:$0xff] %v763_v54  ;;  %573 = vst [vmem:[%s1130_s23 + $0xb8] sm:$0xff] %v787_v55  ;;  %v421_v56 = vpop.f32.mrb[7].mxu0  ;;  %v501_v57 = vpop.f32.mrb[7].mxu1 }
 0x10c   : > { %556 = vst [vmem:[%s1130_s23 + $0x30] sm:$0xff] %v421_v56  ;;  %572 = vst [vmem:[%s1130_s23 + $0xb0] sm:$0xff] %v501_v57 }
 0x10e   : > { %v766_v58 = vpop.f32.mrb[8].mxu0  ;;  %v790_v59 = vpop.f32.mrb[8].mxu1 }
 0x10f   : > { %559 = vst [vmem:[%s1130_s23 + $0x48] sm:$0xff] %v766_v58  ;;  %575 = vst [vmem:[%s1130_s23 + $0xc8] sm:$0xff] %v790_v59  ;;  %v431_v60 = vpop.f32.mrb[9].mxu0  ;;  %v511_v61 = vpop.f32.mrb[9].mxu1 }
 0x110   : > { %558 = vst [vmem:[%s1130_s23 + $0x40] sm:$0xff] %v431_v60  ;;  %574 = vst [vmem:[%s1130_s23 + $0xc0] sm:$0xff] %v511_v61 }
 0x112   : > { %v769_v62 = vpop.f32.mrb[10].mxu0  ;;  %v793_v63 = vpop.f32.mrb[10].mxu1 }
 0x113   : > { %561 = vst [vmem:[%s1130_s23 + $0x58] sm:$0xff] %v769_v62  ;;  %577 = vst [vmem:[%s1130_s23 + $0xd8] sm:$0xff] %v793_v63  ;;  %v441_v0 = vpop.f32.mrb[11].mxu0  ;;  %v521_v1 = vpop.f32.mrb[11].mxu1 }
 0x114   : > { %560 = vst [vmem:[%s1130_s23 + $0x50] sm:$0xff] %v441_v0  ;;  %576 = vst [vmem:[%s1130_s23 + $0xd0] sm:$0xff] %v521_v1 }
 0x116   : > { %v772_v2 = vpop.f32.mrb[12].mxu0  ;;  %v796_v3 = vpop.f32.mrb[12].mxu1 }
 0x117   : > { %563 = vst [vmem:[%s1130_s23 + $0x68] sm:$0xff] %v772_v2  ;;  %579 = vst [vmem:[%s1130_s23 + $0xe8] sm:$0xff] %v796_v3  ;;  %v451_v4 = vpop.f32.mrb[13].mxu0  ;;  %v531_v5 = vpop.f32.mrb[13].mxu1 }
 0x118   : > { %562 = vst [vmem:[%s1130_s23 + $0x60] sm:$0xff] %v451_v4  ;;  %578 = vst [vmem:[%s1130_s23 + $0xe0] sm:$0xff] %v531_v5 }
 0x11a   : > { %v775_v6 = vpop.f32.mrb[14].mxu0  ;;  %v799_v7 = vpop.f32.mrb[14].mxu1 }
 0x11b   : > { %565 = vst [vmem:[%s1130_s23 + $0x78] sm:$0xff] %v775_v6  ;;  %581 = vst [vmem:[%s1130_s23 + $0xf8] sm:$0xff] %v799_v7  ;;  %v461_v8 = vpop.f32.mrb[15].mxu0  ;;  %v541_v9 = vpop.f32.mrb[15].mxu1 }
 0x11c   : > { %564 = vst [vmem:[%s1130_s23 + $0x70] sm:$0xff] %v461_v8  ;;  %580 = vst [vmem:[%s1130_s23 + $0xf0] sm:$0xff] %v541_v9 }
 0x11d   : > { %870 = shalt.err (!%p867_p5)
}
 0x11e   : > { %s871_s6 = scalar_lea.hbm %s1166_s29, 4096  ;;  %s875_s14 = scalar_lea.hbm %s1218_s2, 8192 }
 0x11f   : > { %p872_p7 = scmp.ne.s32.totalorder %s1166_s29, %s871_s6  ;;  %p876_p12 = scmp.lt.u32.totalorder %s1166_s29, %s1218_s2 }
 0x120   : > { %p877_p13 = scmp.lt.u32.totalorder %s875_s14, %s871_s6  ;;  %p879_p1 = scmp.lt.u32.totalorder %s871_s6, %s1166_s29 }
 0x121   : > { %p873_p10 = pnand %p872_p7, %p979_p6 }
 0x122   : > { %p878_p0 = por %p877_p13, %p876_p12 }
 0x123   : > { %p874_p11 = pneg %p873_p10 }
 0x124   : > { %p880_p2 = por %p879_p1, %p878_p0 }
 0x126   : > { %p881_p3 = pnand %p880_p2, %p874_p11 }
 0x128   : > { %884 = shalt.err (!%p881_p3)
}
 0x129   : > { %s923_s21 = smov 128   ;;  %s924_s22 = smov 256  }
 0x12a   : > { %s925_s23 = smov 8  }
 0x12b   : > { %814 = dma.vmem_to_hbm [thread:$0]  (%p979_p6), %s1168_s25, 4096, %s1166_s29, %s583_s13, %s923_s21, %s924_s22, %s925_s23  }
 0x12c PF: > { %s610_s24 = sand.u32 1, %s907_s9   ;;  %p817_p4 = pnand %p665_p9, %p983_p8 }
 0x12d   : > { %s611_s26 = scalar_lea.sflag [#allocation4], %s610_s24 }
 0x12e   : > { %902 = dma.done.wait (!%p817_p4), %s611_s26, 4096  }
 0x12f   : > { %904 = vsyncadd (!%p817_p4), %s611_s26, 4294963200  ;;  %p12_p5 = scmp.ge.s32.totalorder %s964_s15, 4   ;;  %s1221_s9 = smov %s911_s10 }
 0x130   : > { %s1222_s10 = smov %s915_s11  ;;  %s1223_s11 = smov %s977_s18 }
 0x131   : > { %s1224_s12 = smov %s964_s15  ;;  %14 = sbr.rel (!%p12_p5) target bundleno = 3 (0x3), region = 106 }
 0x138   :  { %616 = vsyncpa [#allocation4], 1 }
 0x139   :  { %618 = vsyncpa [#allocation4 + $0x1], 1 }

</bundles_post_ra>
